<compile_context>
chip_gen: v7x
topology: tpu7x:2x2x1
jax: 0.10.0
libtpu: 0.0.40
codegen_flags: <defaults>
</compile_context>

<pallas_src>
import jax
import jax.numpy as jnp
from jax.experimental import pallas as pl
from jax.experimental.pallas import tpu as pltpu


# ---------------------------------------------------------------------------
# Pallas kernel: embedding gather + whole LSTM forward in one invocation.
# ---------------------------------------------------------------------------
def lstm_kernel(idx_ref, emb_ref, wih_ref, whh_ref, b_ref, h0_ref, c0_ref,
                out_ref, hN_ref, cN_ref, x_scratch):
    # idx_ref : SMEM (B, S) int32     token ids (batch-first)
    # emb_ref : VMEM (VOCAB, 1, E)    embedding table (leading axis untiled)
    # wih_ref : VMEM (E, 4H)          W_ih^T
    # whh_ref : VMEM (H, 4H)          W_hh^T
    # b_ref   : VMEM (1, 4H)          b_ih + b_hh
    # h0/c0   : VMEM (1, B, H)
    # out_ref : VMEM (B, S*H)         lane-dense per-step hidden states
    # hN/cN   : VMEM (1, B, H)        final hidden / cell state
    # x_scratch: VMEM (S*B, E)        gathered embeddings, TIME-MAJOR
    B, S = idx_ref.shape
    H = h0_ref.shape[-1]

    # ---- fused embedding gather (time-major rows) --------------------------
    # 16 dynamic first-axis row loads; off the serial recurrence path.
    for t in range(S):
        for b in range(B):
            idx = idx_ref[b, t]
            x_scratch[pl.ds(t * B + b, 1), :] = emb_ref[idx]      # (1, E)

    # ---- hoisted input projection for ALL timesteps: one MXU push ----------
    gx = jnp.dot(x_scratch[...], wih_ref[...],
                 preferred_element_type=jnp.float32) + b_ref[...]  # (S*B, 4H)

    whh = whh_ref[...]                                             # (H, 4H)
    h = h0_ref[0]                                                  # (B, H)
    c = c0_ref[0]                                                  # (B, H)

    # ---- fully unrolled recurrence (S static & small) -----------------------
    hs = []
    for t in range(S):
        # contiguous static sublane slice of the flat time-major projection
        gates = gx[t * B:(t + 1) * B, :] + jnp.dot(
            h, whh, preferred_element_type=jnp.float32)            # (B, 4H)
        sig = jax.nn.sigmoid(gates)          # one EUP push covers i, f, o
        i_g = sig[:, 0 * H:1 * H]
        f_g = sig[:, 1 * H:2 * H]
        o_g = sig[:, 3 * H:4 * H]
        g_g = jnp.tanh(gates[:, 2 * H:3 * H])
        c = f_g * c + i_g * g_g
        h = o_g * jnp.tanh(c)
        hs.append(h)

    # Lane-dense single store: (B, S*H) = (2, 256) -> unmasked vst, one DMA.
    out_ref[...] = jnp.concatenate(hs, axis=-1).astype(out_ref.dtype)
    hN_ref[0] = h.astype(hN_ref.dtype)
    cN_ref[0] = c.astype(cN_ref.dtype)


# ---------------------------------------------------------------------------
# One-time parameter preprocessing (hoisted out of the per-call path).
# ---------------------------------------------------------------------------
def prepare_params(params):
    vocab, e = params["embedding"].shape
    return {
        "emb3d": params["embedding"].reshape(vocab, 1, e),   # untiled lead axis
        "w_ih_t": jnp.asarray(params["w_ih"].T),             # (E, 4H)
        "w_hh_t": jnp.asarray(params["w_hh"].T),             # (H, 4H)
        "bias": (params["b_ih"] + params["b_hh"]).reshape(1, -1),
    }


# ---------------------------------------------------------------------------
# Wrapper: single pallas_call, no per-call wrapper compute besides a
# contiguous output reshape.
# ---------------------------------------------------------------------------
def decoder_forward(prep, decoder_input, hidden):
    """decoder_input: int32 (B, S); hidden: (h0, c0) each (1, B, H)."""
    h0, c0 = hidden
    B, S = decoder_input.shape
    vocab, _, E = prep["emb3d"].shape
    H = prep["w_hh_t"].shape[0]

    vmem = pl.BlockSpec(memory_space=pltpu.MemorySpace.VMEM)
    smem = pl.BlockSpec(memory_space=pltpu.MemorySpace.SMEM)

    flops = int(2 * B * S * E * 4 * H + 2 * S * B * H * 4 * H + 10 * S * B * H)
    transcendentals = int(S * B * 5 * H)
    bytes_accessed = int(4 * (B * S + vocab * E + E * 4 * H + H * 4 * H
                              + 4 * H + 2 * B * H + B * S * H + 2 * B * H))

    out_flat, hN, cN = pl.pallas_call(
        lstm_kernel,
        out_shape=(
            jax.ShapeDtypeStruct((B, S * H), jnp.float32),   # lane-dense out
            jax.ShapeDtypeStruct((1, B, H), jnp.float32),    # final h
            jax.ShapeDtypeStruct((1, B, H), jnp.float32),    # final c
        ),
        in_specs=[smem, vmem, vmem, vmem, vmem, vmem, vmem],
        out_specs=(vmem, vmem, vmem),
        scratch_shapes=[pltpu.VMEM((S * B, E), jnp.float32)],
        cost_estimate=pl.CostEstimate(flops=flops,
                                      transcendentals=transcendentals,
                                      bytes_accessed=bytes_accessed),
    )(decoder_input, prep["emb3d"], prep["w_ih_t"], prep["w_hh_t"],
      prep["bias"], h0, c0)

    return out_flat.reshape(B, S, H), (hN, cN)


# ---------------------------------------------------------------------------
# Pure-JAX reference (mirrors torch.nn.LSTM math) for correctness checking.
# ---------------------------------------------------------------------------
def decoder_forward_ref(params, decoder_input, hidden):
    h0, c0 = hidden
    emb = params["embedding"][decoder_input]                # (B, S, E)
    H = params["w_hh"].shape[1]
    b = params["b_ih"] + params["b_hh"]

    def step(carry, x_t):
        h, c = carry
        gates = x_t @ params["w_ih"].T + h @ params["w_hh"].T + b
        i = jax.nn.sigmoid(gates[:, 0 * H:1 * H])
        f = jax.nn.sigmoid(gates[:, 1 * H:2 * H])
        g = jnp.tanh(gates[:, 2 * H:3 * H])
        o = jax.nn.sigmoid(gates[:, 3 * H:4 * H])
        c_new = f * c + i * g
        h_new = o * jnp.tanh(c_new)
        return (h_new, c_new), h_new

    x_tm = jnp.transpose(emb, (1, 0, 2))                    # (S, B, E)
    (hN, cN), out = jax.lax.scan(step, (h0[0], c0[0]), x_tm)
    return jnp.transpose(out, (1, 0, 2)), (hN[None], cN[None])


# ---------------------------------------------------------------------------
# Deterministic parameter init (shapes follow nn.Embedding / nn.LSTM).
# ---------------------------------------------------------------------------
def init_params(key, vocab, dim_embed, dim_hidden):
    k = jax.random.split(key, 5)
    bound = 1.0 / jnp.sqrt(dim_hidden)
    return {
        "embedding": jax.random.normal(k[0], (vocab, dim_embed), jnp.float32),
        "w_ih": jax.random.uniform(k[1], (4 * dim_hidden, dim_embed),
                                   jnp.float32, -bound, bound),
        "w_hh": jax.random.uniform(k[2], (4 * dim_hidden, dim_hidden),
                                   jnp.float32, -bound, bound),
        "b_ih": jax.random.uniform(k[3], (4 * dim_hidden,),
                                   jnp.float32, -bound, bound),
        "b_hh": jax.random.uniform(k[4], (4 * dim_hidden,),
                                   jnp.float32, -bound, bound),
    }


if __name__ == "__main__":
    B, S = 2, 8                     # batch, sequence length
    E, H = 16, 32                   # dim_decoder_embedding, dim_decoder_hidden
    VOCAB = 50                      # target_corpus_len

    root = jax.random.PRNGKey(0)
    k_in, k_h, k_c, k_params = jax.random.split(root, 4)

    params = init_params(k_params, VOCAB, E, H)
    prep = prepare_params(params)   # one-time weight preprocessing

    decoder_input = jax.random.randint(k_in, (B, S), 0, VOCAB, jnp.int32)
    h0 = jax.random.normal(k_h, (1, B, H), jnp.float32)
    c0 = jax.random.normal(k_c, (1, B, H), jnp.float32)

    out, (hN, cN) = decoder_forward(prep, decoder_input, (h0, c0))
    jax.block_until_ready((out, hN, cN))

    out_r, (hN_r, cN_r) = decoder_forward_ref(params, decoder_input, (h0, c0))
    assert out.shape == (B, S, H) and hN.shape == (1, B, H) and cN.shape == (1, B, H)
    assert jnp.allclose(out, out_r, atol=1e-5, rtol=1e-5)
    assert jnp.allclose(hN, hN_r, atol=1e-5, rtol=1e-5)
    assert jnp.allclose(cN, cN_r, atol=1e-5, rtol=1e-5)

    print("KERNEL_OK")
</pallas_src>

<mosaic_0001>
module attributes {stable_mosaic.version = 11 : i64} {
  func.func @lstm_kernel(%arg0: memref<2x8xi32, #tpu.memory_space<smem>>, %arg1: memref<50x1x16xf32, #tpu.memory_space<vmem>>, %arg2: memref<16x128xf32, #tpu.memory_space<vmem>>, %arg3: memref<32x128xf32, #tpu.memory_space<vmem>>, %arg4: memref<1x128xf32, #tpu.memory_space<vmem>>, %arg5: memref<1x2x32xf32, #tpu.memory_space<vmem>>, %arg6: memref<1x2x32xf32, #tpu.memory_space<vmem>>, %arg7: memref<2x256xf32, #tpu.memory_space<vmem>>, %arg8: memref<1x2x32xf32, #tpu.memory_space<vmem>>, %arg9: memref<1x2x32xf32, #tpu.memory_space<vmem>>, %arg10: memref<16x16xf32, #tpu.memory_space<vmem>>) attributes {dimension_semantics = [], scalar_prefetch = 0 : i64, scratch_operands = 1 : i64, tpu.core_type = #tpu.core_type<tc>} {
    %c0 = arith.constant 0 : index
    %c0_0 = arith.constant 0 : index
    %0 = memref.load %arg0[%c0, %c0_0] : memref<2x8xi32, #tpu.memory_space<smem>>
    %1 = arith.index_cast %0 : i32 to index
    %c0_1 = arith.constant 0 : index
    %c0_2 = arith.constant 0 : index
    %2 = vector.load %arg1[%1, %c0_1, %c0_2] : memref<50x1x16xf32, #tpu.memory_space<vmem>>, vector<1x1x16xf32>
    %3 = vector.shape_cast %2 : vector<1x1x16xf32> to vector<1x16xf32>
    %c0_3 = arith.constant 0 : index
    %c0_4 = arith.constant 0 : index
    %4 = vector.load %arg10[%c0_3, %c0_4] : memref<16x16xf32, #tpu.memory_space<vmem>>, vector<1x16xf32>
    tpu.vector_store %arg10[%c0_3, %c0_4], %3 {strides = array<i32>} : memref<16x16xf32, #tpu.memory_space<vmem>>, vector<1x16xf32>,
    %c1 = arith.constant 1 : index
    %c0_5 = arith.constant 0 : index
    %5 = memref.load %arg0[%c1, %c0_5] : memref<2x8xi32, #tpu.memory_space<smem>>
    %6 = arith.index_cast %5 : i32 to index
    %c0_6 = arith.constant 0 : index
    %c0_7 = arith.constant 0 : index
    %7 = vector.load %arg1[%6, %c0_6, %c0_7] : memref<50x1x16xf32, #tpu.memory_space<vmem>>, vector<1x1x16xf32>
    %8 = vector.shape_cast %7 : vector<1x1x16xf32> to vector<1x16xf32>
    %c1_8 = arith.constant 1 : index
    %c0_9 = arith.constant 0 : index
    %9 = vector.load %arg10[%c1_8, %c0_9] : memref<16x16xf32, #tpu.memory_space<vmem>>, vector<1x16xf32>
    tpu.vector_store %arg10[%c1_8, %c0_9], %8 {strides = array<i32>} : memref<16x16xf32, #tpu.memory_space<vmem>>, vector<1x16xf32>,
    %c0_10 = arith.constant 0 : index
    %c1_11 = arith.constant 1 : index
    %10 = memref.load %arg0[%c0_10, %c1_11] : memref<2x8xi32, #tpu.memory_space<smem>>
    %11 = arith.index_cast %10 : i32 to index
    %c0_12 = arith.constant 0 : index
    %c0_13 = arith.constant 0 : index
    %12 = vector.load %arg1[%11, %c0_12, %c0_13] : memref<50x1x16xf32, #tpu.memory_space<vmem>>, vector<1x1x16xf32>
    %13 = vector.shape_cast %12 : vector<1x1x16xf32> to vector<1x16xf32>
    %c2 = arith.constant 2 : index
    %c0_14 = arith.constant 0 : index
    %14 = vector.load %arg10[%c2, %c0_14] : memref<16x16xf32, #tpu.memory_space<vmem>>, vector<1x16xf32>
    tpu.vector_store %arg10[%c2, %c0_14], %13 {strides = array<i32>} : memref<16x16xf32, #tpu.memory_space<vmem>>, vector<1x16xf32>,
    %c1_15 = arith.constant 1 : index
    %c1_16 = arith.constant 1 : index
    %15 = memref.load %arg0[%c1_15, %c1_16] : memref<2x8xi32, #tpu.memory_space<smem>>
    %16 = arith.index_cast %15 : i32 to index
    %c0_17 = arith.constant 0 : index
    %c0_18 = arith.constant 0 : index
    %17 = vector.load %arg1[%16, %c0_17, %c0_18] : memref<50x1x16xf32, #tpu.memory_space<vmem>>, vector<1x1x16xf32>
    %18 = vector.shape_cast %17 : vector<1x1x16xf32> to vector<1x16xf32>
    %c3 = arith.constant 3 : index
    %c0_19 = arith.constant 0 : index
    %19 = vector.load %arg10[%c3, %c0_19] : memref<16x16xf32, #tpu.memory_space<vmem>>, vector<1x16xf32>
    tpu.vector_store %arg10[%c3, %c0_19], %18 {strides = array<i32>} : memref<16x16xf32, #tpu.memory_space<vmem>>, vector<1x16xf32>,
    %c0_20 = arith.constant 0 : index
    %c2_21 = arith.constant 2 : index
    %20 = memref.load %arg0[%c0_20, %c2_21] : memref<2x8xi32, #tpu.memory_space<smem>>
    %21 = arith.index_cast %20 : i32 to index
    %c0_22 = arith.constant 0 : index
    %c0_23 = arith.constant 0 : index
    %22 = vector.load %arg1[%21, %c0_22, %c0_23] : memref<50x1x16xf32, #tpu.memory_space<vmem>>, vector<1x1x16xf32>
    %23 = vector.shape_cast %22 : vector<1x1x16xf32> to vector<1x16xf32>
    %c4 = arith.constant 4 : index
    %c0_24 = arith.constant 0 : index
    %24 = vector.load %arg10[%c4, %c0_24] : memref<16x16xf32, #tpu.memory_space<vmem>>, vector<1x16xf32>
    tpu.vector_store %arg10[%c4, %c0_24], %23 {strides = array<i32>} : memref<16x16xf32, #tpu.memory_space<vmem>>, vector<1x16xf32>,
    %c1_25 = arith.constant 1 : index
    %c2_26 = arith.constant 2 : index
    %25 = memref.load %arg0[%c1_25, %c2_26] : memref<2x8xi32, #tpu.memory_space<smem>>
    %26 = arith.index_cast %25 : i32 to index
    %c0_27 = arith.constant 0 : index
    %c0_28 = arith.constant 0 : index
    %27 = vector.load %arg1[%26, %c0_27, %c0_28] : memref<50x1x16xf32, #tpu.memory_space<vmem>>, vector<1x1x16xf32>
    %28 = vector.shape_cast %27 : vector<1x1x16xf32> to vector<1x16xf32>
    %c5 = arith.constant 5 : index
    %c0_29 = arith.constant 0 : index
    %29 = vector.load %arg10[%c5, %c0_29] : memref<16x16xf32, #tpu.memory_space<vmem>>, vector<1x16xf32>
    tpu.vector_store %arg10[%c5, %c0_29], %28 {strides = array<i32>} : memref<16x16xf32, #tpu.memory_space<vmem>>, vector<1x16xf32>,
    %c0_30 = arith.constant 0 : index
    %c3_31 = arith.constant 3 : index
    %30 = memref.load %arg0[%c0_30, %c3_31] : memref<2x8xi32, #tpu.memory_space<smem>>
    %31 = arith.index_cast %30 : i32 to index
    %c0_32 = arith.constant 0 : index
    %c0_33 = arith.constant 0 : index
    %32 = vector.load %arg1[%31, %c0_32, %c0_33] : memref<50x1x16xf32, #tpu.memory_space<vmem>>, vector<1x1x16xf32>
    %33 = vector.shape_cast %32 : vector<1x1x16xf32> to vector<1x16xf32>
    %c6 = arith.constant 6 : index
    %c0_34 = arith.constant 0 : index
    %34 = vector.load %arg10[%c6, %c0_34] : memref<16x16xf32, #tpu.memory_space<vmem>>, vector<1x16xf32>
    tpu.vector_store %arg10[%c6, %c0_34], %33 {strides = array<i32>} : memref<16x16xf32, #tpu.memory_space<vmem>>, vector<1x16xf32>,
    %c1_35 = arith.constant 1 : index
    %c3_36 = arith.constant 3 : index
    %35 = memref.load %arg0[%c1_35, %c3_36] : memref<2x8xi32, #tpu.memory_space<smem>>
    %36 = arith.index_cast %35 : i32 to index
    %c0_37 = arith.constant 0 : index
    %c0_38 = arith.constant 0 : index
    %37 = vector.load %arg1[%36, %c0_37, %c0_38] : memref<50x1x16xf32, #tpu.memory_space<vmem>>, vector<1x1x16xf32>
    %38 = vector.shape_cast %37 : vector<1x1x16xf32> to vector<1x16xf32>
    %c7 = arith.constant 7 : index
    %c0_39 = arith.constant 0 : index
    %39 = vector.load %arg10[%c7, %c0_39] : memref<16x16xf32, #tpu.memory_space<vmem>>, vector<1x16xf32>
    tpu.vector_store %arg10[%c7, %c0_39], %38 {strides = array<i32>} : memref<16x16xf32, #tpu.memory_space<vmem>>, vector<1x16xf32>,
    %c0_40 = arith.constant 0 : index
    %c4_41 = arith.constant 4 : index
    %40 = memref.load %arg0[%c0_40, %c4_41] : memref<2x8xi32, #tpu.memory_space<smem>>
    %41 = arith.index_cast %40 : i32 to index
    %c0_42 = arith.constant 0 : index
    %c0_43 = arith.constant 0 : index
    %42 = vector.load %arg1[%41, %c0_42, %c0_43] : memref<50x1x16xf32, #tpu.memory_space<vmem>>, vector<1x1x16xf32>
    %43 = vector.shape_cast %42 : vector<1x1x16xf32> to vector<1x16xf32>
    %c8 = arith.constant 8 : index
    %c0_44 = arith.constant 0 : index
    %44 = vector.load %arg10[%c8, %c0_44] : memref<16x16xf32, #tpu.memory_space<vmem>>, vector<1x16xf32>
    tpu.vector_store %arg10[%c8, %c0_44], %43 {strides = array<i32>} : memref<16x16xf32, #tpu.memory_space<vmem>>, vector<1x16xf32>,
    %c1_45 = arith.constant 1 : index
    %c4_46 = arith.constant 4 : index
    %45 = memref.load %arg0[%c1_45, %c4_46] : memref<2x8xi32, #tpu.memory_space<smem>>
    %46 = arith.index_cast %45 : i32 to index
    %c0_47 = arith.constant 0 : index
    %c0_48 = arith.constant 0 : index
    %47 = vector.load %arg1[%46, %c0_47, %c0_48] : memref<50x1x16xf32, #tpu.memory_space<vmem>>, vector<1x1x16xf32>
    %48 = vector.shape_cast %47 : vector<1x1x16xf32> to vector<1x16xf32>
    %c9 = arith.constant 9 : index
    %c0_49 = arith.constant 0 : index
    %49 = vector.load %arg10[%c9, %c0_49] : memref<16x16xf32, #tpu.memory_space<vmem>>, vector<1x16xf32>
    tpu.vector_store %arg10[%c9, %c0_49], %48 {strides = array<i32>} : memref<16x16xf32, #tpu.memory_space<vmem>>, vector<1x16xf32>,
    %c0_50 = arith.constant 0 : index
    %c5_51 = arith.constant 5 : index
    %50 = memref.load %arg0[%c0_50, %c5_51] : memref<2x8xi32, #tpu.memory_space<smem>>
    %51 = arith.index_cast %50 : i32 to index
    %c0_52 = arith.constant 0 : index
    %c0_53 = arith.constant 0 : index
    %52 = vector.load %arg1[%51, %c0_52, %c0_53] : memref<50x1x16xf32, #tpu.memory_space<vmem>>, vector<1x1x16xf32>
    %53 = vector.shape_cast %52 : vector<1x1x16xf32> to vector<1x16xf32>
    %c10 = arith.constant 10 : index
    %c0_54 = arith.constant 0 : index
    %54 = vector.load %arg10[%c10, %c0_54] : memref<16x16xf32, #tpu.memory_space<vmem>>, vector<1x16xf32>
    tpu.vector_store %arg10[%c10, %c0_54], %53 {strides = array<i32>} : memref<16x16xf32, #tpu.memory_space<vmem>>, vector<1x16xf32>,
    %c1_55 = arith.constant 1 : index
    %c5_56 = arith.constant 5 : index
    %55 = memref.load %arg0[%c1_55, %c5_56] : memref<2x8xi32, #tpu.memory_space<smem>>
    %56 = arith.index_cast %55 : i32 to index
    %c0_57 = arith.constant 0 : index
    %c0_58 = arith.constant 0 : index
    %57 = vector.load %arg1[%56, %c0_57, %c0_58] : memref<50x1x16xf32, #tpu.memory_space<vmem>>, vector<1x1x16xf32>
    %58 = vector.shape_cast %57 : vector<1x1x16xf32> to vector<1x16xf32>
    %c11 = arith.constant 11 : index
    %c0_59 = arith.constant 0 : index
    %59 = vector.load %arg10[%c11, %c0_59] : memref<16x16xf32, #tpu.memory_space<vmem>>, vector<1x16xf32>
    tpu.vector_store %arg10[%c11, %c0_59], %58 {strides = array<i32>} : memref<16x16xf32, #tpu.memory_space<vmem>>, vector<1x16xf32>,
    %c0_60 = arith.constant 0 : index
    %c6_61 = arith.constant 6 : index
    %60 = memref.load %arg0[%c0_60, %c6_61] : memref<2x8xi32, #tpu.memory_space<smem>>
    %61 = arith.index_cast %60 : i32 to index
    %c0_62 = arith.constant 0 : index
    %c0_63 = arith.constant 0 : index
    %62 = vector.load %arg1[%61, %c0_62, %c0_63] : memref<50x1x16xf32, #tpu.memory_space<vmem>>, vector<1x1x16xf32>
    %63 = vector.shape_cast %62 : vector<1x1x16xf32> to vector<1x16xf32>
    %c12 = arith.constant 12 : index
    %c0_64 = arith.constant 0 : index
    %64 = vector.load %arg10[%c12, %c0_64] : memref<16x16xf32, #tpu.memory_space<vmem>>, vector<1x16xf32>
    tpu.vector_store %arg10[%c12, %c0_64], %63 {strides = array<i32>} : memref<16x16xf32, #tpu.memory_space<vmem>>, vector<1x16xf32>,
    %c1_65 = arith.constant 1 : index
    %c6_66 = arith.constant 6 : index
    %65 = memref.load %arg0[%c1_65, %c6_66] : memref<2x8xi32, #tpu.memory_space<smem>>
    %66 = arith.index_cast %65 : i32 to index
    %c0_67 = arith.constant 0 : index
    %c0_68 = arith.constant 0 : index
    %67 = vector.load %arg1[%66, %c0_67, %c0_68] : memref<50x1x16xf32, #tpu.memory_space<vmem>>, vector<1x1x16xf32>
    %68 = vector.shape_cast %67 : vector<1x1x16xf32> to vector<1x16xf32>
    %c13 = arith.constant 13 : index
    %c0_69 = arith.constant 0 : index
    %69 = vector.load %arg10[%c13, %c0_69] : memref<16x16xf32, #tpu.memory_space<vmem>>, vector<1x16xf32>
    tpu.vector_store %arg10[%c13, %c0_69], %68 {strides = array<i32>} : memref<16x16xf32, #tpu.memory_space<vmem>>, vector<1x16xf32>,
    %c0_70 = arith.constant 0 : index
    %c7_71 = arith.constant 7 : index
    %70 = memref.load %arg0[%c0_70, %c7_71] : memref<2x8xi32, #tpu.memory_space<smem>>
    %71 = arith.index_cast %70 : i32 to index
    %c0_72 = arith.constant 0 : index
    %c0_73 = arith.constant 0 : index
    %72 = vector.load %arg1[%71, %c0_72, %c0_73] : memref<50x1x16xf32, #tpu.memory_space<vmem>>, vector<1x1x16xf32>
    %73 = vector.shape_cast %72 : vector<1x1x16xf32> to vector<1x16xf32>
    %c14 = arith.constant 14 : index
    %c0_74 = arith.constant 0 : index
    %74 = vector.load %arg10[%c14, %c0_74] : memref<16x16xf32, #tpu.memory_space<vmem>>, vector<1x16xf32>
    tpu.vector_store %arg10[%c14, %c0_74], %73 {strides = array<i32>} : memref<16x16xf32, #tpu.memory_space<vmem>>, vector<1x16xf32>,
    %c1_75 = arith.constant 1 : index
    %c7_76 = arith.constant 7 : index
    %75 = memref.load %arg0[%c1_75, %c7_76] : memref<2x8xi32, #tpu.memory_space<smem>>
    %76 = arith.index_cast %75 : i32 to index
    %c0_77 = arith.constant 0 : index
    %c0_78 = arith.constant 0 : index
    %77 = vector.load %arg1[%76, %c0_77, %c0_78] : memref<50x1x16xf32, #tpu.memory_space<vmem>>, vector<1x1x16xf32>
    %78 = vector.shape_cast %77 : vector<1x1x16xf32> to vector<1x16xf32>
    %c15 = arith.constant 15 : index
    %c0_79 = arith.constant 0 : index
    %79 = vector.load %arg10[%c15, %c0_79] : memref<16x16xf32, #tpu.memory_space<vmem>>, vector<1x16xf32>
    tpu.vector_store %arg10[%c15, %c0_79], %78 {strides = array<i32>} : memref<16x16xf32, #tpu.memory_space<vmem>>, vector<1x16xf32>,
    %c0_80 = arith.constant 0 : index
    %c0_81 = arith.constant 0 : index
    %80 = vector.load %arg10[%c0_80, %c0_81] : memref<16x16xf32, #tpu.memory_space<vmem>>, vector<16x16xf32>
    %c0_82 = arith.constant 0 : index
    %c0_83 = arith.constant 0 : index
    %81 = vector.load %arg2[%c0_82, %c0_83] : memref<16x128xf32, #tpu.memory_space<vmem>>, vector<16x128xf32>
    %cst = arith.constant dense<0.000000e+00> : vector<16x128xf32>
    %82 = tpu.matmul %80, %81, %cst {dimension_numbers = #tpu.dot_dimension_numbers<[1], [0], [0], [1], [0, 0, 1, 1], [], []>} : vector<16x16xf32>, vector<16x128xf32>, vector<16x128xf32> -> vector<16x128xf32>
    %c0_84 = arith.constant 0 : index
    %c0_85 = arith.constant 0 : index
    %83 = vector.load %arg4[%c0_84, %c0_85] : memref<1x128xf32, #tpu.memory_space<vmem>>, vector<1x128xf32>
    %84 = vector.broadcast %83 : vector<1x128xf32> to vector<16x128xf32>
    %85 = arith.addf %82, %84 : vector<16x128xf32>
    %c0_86 = arith.constant 0 : index
    %c0_87 = arith.constant 0 : index
    %86 = vector.load %arg3[%c0_86, %c0_87] : memref<32x128xf32, #tpu.memory_space<vmem>>, vector<32x128xf32>
    %c0_88 = arith.constant 0 : index
    %c0_89 = arith.constant 0 : index
    %c0_90 = arith.constant 0 : index
    %87 = vector.load %arg5[%c0_88, %c0_89, %c0_90] : memref<1x2x32xf32, #tpu.memory_space<vmem>>, vector<1x2x32xf32>
    %88 = vector.shape_cast %87 : vector<1x2x32xf32> to vector<2x32xf32>
    %c0_91 = arith.constant 0 : index
    %c0_92 = arith.constant 0 : index
    %c0_93 = arith.constant 0 : index
    %89 = vector.load %arg6[%c0_91, %c0_92, %c0_93] : memref<1x2x32xf32, #tpu.memory_space<vmem>>, vector<1x2x32xf32>
    %90 = vector.shape_cast %89 : vector<1x2x32xf32> to vector<2x32xf32>
    %91 = vector.extract_strided_slice %85 {offsets = [0, 0], sizes = [2, 128], strides = [1, 1]} : vector<16x128xf32> to vector<2x128xf32>
    %cst_94 = arith.constant dense<0.000000e+00> : vector<2x128xf32>
    %92 = tpu.matmul %88, %86, %cst_94 {dimension_numbers = #tpu.dot_dimension_numbers<[1], [0], [0], [1], [0, 0, 1, 1], [], []>} : vector<2x32xf32>, vector<32x128xf32>, vector<2x128xf32> -> vector<2x128xf32>
    %93 = arith.addf %91, %92 : vector<2x128xf32>
    %94 = arith.negf %93 : vector<2x128xf32>
    %95 = math.exp %94 : vector<2x128xf32>
    %cst_95 = arith.constant 1.000000e+00 : f32
    %96 = vector.broadcast %cst_95 : f32 to vector<2x128xf32>
    %97 = arith.addf %96, %95 : vector<2x128xf32>
    %98 = arith.divf %96, %97 : vector<2x128xf32>
    %99 = vector.extract_strided_slice %98 {offsets = [0, 0], sizes = [2, 32], strides = [1, 1]} : vector<2x128xf32> to vector<2x32xf32>
    %100 = vector.extract_strided_slice %98 {offsets = [0, 32], sizes = [2, 32], strides = [1, 1]} : vector<2x128xf32> to vector<2x32xf32>
    %101 = vector.extract_strided_slice %98 {offsets = [0, 96], sizes = [2, 32], strides = [1, 1]} : vector<2x128xf32> to vector<2x32xf32>
    %102 = vector.extract_strided_slice %93 {offsets = [0, 64], sizes = [2, 32], strides = [1, 1]} : vector<2x128xf32> to vector<2x32xf32>
    %103 = math.tanh %102 : vector<2x32xf32>
    %104 = arith.mulf %100, %90 : vector<2x32xf32>
    %105 = arith.mulf %99, %103 : vector<2x32xf32>
    %106 = arith.addf %104, %105 : vector<2x32xf32>
    %107 = math.tanh %106 : vector<2x32xf32>
    %108 = arith.mulf %101, %107 : vector<2x32xf32>
    %109 = vector.extract_strided_slice %85 {offsets = [2, 0], sizes = [2, 128], strides = [1, 1]} : vector<16x128xf32> to vector<2x128xf32>
    %cst_96 = arith.constant dense<0.000000e+00> : vector<2x128xf32>
    %110 = tpu.matmul %108, %86, %cst_96 {dimension_numbers = #tpu.dot_dimension_numbers<[1], [0], [0], [1], [0, 0, 1, 1], [], []>} : vector<2x32xf32>, vector<32x128xf32>, vector<2x128xf32> -> vector<2x128xf32>
    %111 = arith.addf %109, %110 : vector<2x128xf32>
    %112 = arith.negf %111 : vector<2x128xf32>
    %113 = math.exp %112 : vector<2x128xf32>
    %cst_97 = arith.constant 1.000000e+00 : f32
    %114 = vector.broadcast %cst_97 : f32 to vector<2x128xf32>
    %115 = arith.addf %114, %113 : vector<2x128xf32>
    %116 = arith.divf %114, %115 : vector<2x128xf32>
    %117 = vector.extract_strided_slice %116 {offsets = [0, 0], sizes = [2, 32], strides = [1, 1]} : vector<2x128xf32> to vector<2x32xf32>
    %118 = vector.extract_strided_slice %116 {offsets = [0, 32], sizes = [2, 32], strides = [1, 1]} : vector<2x128xf32> to vector<2x32xf32>
    %119 = vector.extract_strided_slice %116 {offsets = [0, 96], sizes = [2, 32], strides = [1, 1]} : vector<2x128xf32> to vector<2x32xf32>
    %120 = vector.extract_strided_slice %111 {offsets = [0, 64], sizes = [2, 32], strides = [1, 1]} : vector<2x128xf32> to vector<2x32xf32>
    %121 = math.tanh %120 : vector<2x32xf32>
    %122 = arith.mulf %118, %106 : vector<2x32xf32>
    %123 = arith.mulf %117, %121 : vector<2x32xf32>
    %124 = arith.addf %122, %123 : vector<2x32xf32>
    %125 = math.tanh %124 : vector<2x32xf32>
    %126 = arith.mulf %119, %125 : vector<2x32xf32>
    %127 = vector.extract_strided_slice %85 {offsets = [4, 0], sizes = [2, 128], strides = [1, 1]} : vector<16x128xf32> to vector<2x128xf32>
    %cst_98 = arith.constant dense<0.000000e+00> : vector<2x128xf32>
    %128 = tpu.matmul %126, %86, %cst_98 {dimension_numbers = #tpu.dot_dimension_numbers<[1], [0], [0], [1], [0, 0, 1, 1], [], []>} : vector<2x32xf32>, vector<32x128xf32>, vector<2x128xf32> -> vector<2x128xf32>
    %129 = arith.addf %127, %128 : vector<2x128xf32>
    %130 = arith.negf %129 : vector<2x128xf32>
    %131 = math.exp %130 : vector<2x128xf32>
    %cst_99 = arith.constant 1.000000e+00 : f32
    %132 = vector.broadcast %cst_99 : f32 to vector<2x128xf32>
    %133 = arith.addf %132, %131 : vector<2x128xf32>
    %134 = arith.divf %132, %133 : vector<2x128xf32>
    %135 = vector.extract_strided_slice %134 {offsets = [0, 0], sizes = [2, 32], strides = [1, 1]} : vector<2x128xf32> to vector<2x32xf32>
    %136 = vector.extract_strided_slice %134 {offsets = [0, 32], sizes = [2, 32], strides = [1, 1]} : vector<2x128xf32> to vector<2x32xf32>
    %137 = vector.extract_strided_slice %134 {offsets = [0, 96], sizes = [2, 32], strides = [1, 1]} : vector<2x128xf32> to vector<2x32xf32>
    %138 = vector.extract_strided_slice %129 {offsets = [0, 64], sizes = [2, 32], strides = [1, 1]} : vector<2x128xf32> to vector<2x32xf32>
    %139 = math.tanh %138 : vector<2x32xf32>
    %140 = arith.mulf %136, %124 : vector<2x32xf32>
    %141 = arith.mulf %135, %139 : vector<2x32xf32>
    %142 = arith.addf %140, %141 : vector<2x32xf32>
    %143 = math.tanh %142 : vector<2x32xf32>
    %144 = arith.mulf %137, %143 : vector<2x32xf32>
    %145 = vector.extract_strided_slice %85 {offsets = [6, 0], sizes = [2, 128], strides = [1, 1]} : vector<16x128xf32> to vector<2x128xf32>
    %cst_100 = arith.constant dense<0.000000e+00> : vector<2x128xf32>
    %146 = tpu.matmul %144, %86, %cst_100 {dimension_numbers = #tpu.dot_dimension_numbers<[1], [0], [0], [1], [0, 0, 1, 1], [], []>} : vector<2x32xf32>, vector<32x128xf32>, vector<2x128xf32> -> vector<2x128xf32>
    %147 = arith.addf %145, %146 : vector<2x128xf32>
    %148 = arith.negf %147 : vector<2x128xf32>
    %149 = math.exp %148 : vector<2x128xf32>
    %cst_101 = arith.constant 1.000000e+00 : f32
    %150 = vector.broadcast %cst_101 : f32 to vector<2x128xf32>
    %151 = arith.addf %150, %149 : vector<2x128xf32>
    %152 = arith.divf %150, %151 : vector<2x128xf32>
    %153 = vector.extract_strided_slice %152 {offsets = [0, 0], sizes = [2, 32], strides = [1, 1]} : vector<2x128xf32> to vector<2x32xf32>
    %154 = vector.extract_strided_slice %152 {offsets = [0, 32], sizes = [2, 32], strides = [1, 1]} : vector<2x128xf32> to vector<2x32xf32>
    %155 = vector.extract_strided_slice %152 {offsets = [0, 96], sizes = [2, 32], strides = [1, 1]} : vector<2x128xf32> to vector<2x32xf32>
    %156 = vector.extract_strided_slice %147 {offsets = [0, 64], sizes = [2, 32], strides = [1, 1]} : vector<2x128xf32> to vector<2x32xf32>
    %157 = math.tanh %156 : vector<2x32xf32>
    %158 = arith.mulf %154, %142 : vector<2x32xf32>
    %159 = arith.mulf %153, %157 : vector<2x32xf32>
    %160 = arith.addf %158, %159 : vector<2x32xf32>
    %161 = math.tanh %160 : vector<2x32xf32>
    %162 = arith.mulf %155, %161 : vector<2x32xf32>
    %163 = vector.extract_strided_slice %85 {offsets = [8, 0], sizes = [2, 128], strides = [1, 1]} : vector<16x128xf32> to vector<2x128xf32>
    %cst_102 = arith.constant dense<0.000000e+00> : vector<2x128xf32>
    %164 = tpu.matmul %162, %86, %cst_102 {dimension_numbers = #tpu.dot_dimension_numbers<[1], [0], [0], [1], [0, 0, 1, 1], [], []>} : vector<2x32xf32>, vector<32x128xf32>, vector<2x128xf32> -> vector<2x128xf32>
    %165 = arith.addf %163, %164 : vector<2x128xf32>
    %166 = arith.negf %165 : vector<2x128xf32>
    %167 = math.exp %166 : vector<2x128xf32>
    %cst_103 = arith.constant 1.000000e+00 : f32
    %168 = vector.broadcast %cst_103 : f32 to vector<2x128xf32>
    %169 = arith.addf %168, %167 : vector<2x128xf32>
    %170 = arith.divf %168, %169 : vector<2x128xf32>
    %171 = vector.extract_strided_slice %170 {offsets = [0, 0], sizes = [2, 32], strides = [1, 1]} : vector<2x128xf32> to vector<2x32xf32>
    %172 = vector.extract_strided_slice %170 {offsets = [0, 32], sizes = [2, 32], strides = [1, 1]} : vector<2x128xf32> to vector<2x32xf32>
    %173 = vector.extract_strided_slice %170 {offsets = [0, 96], sizes = [2, 32], strides = [1, 1]} : vector<2x128xf32> to vector<2x32xf32>
    %174 = vector.extract_strided_slice %165 {offsets = [0, 64], sizes = [2, 32], strides = [1, 1]} : vector<2x128xf32> to vector<2x32xf32>
    %175 = math.tanh %174 : vector<2x32xf32>
    %176 = arith.mulf %172, %160 : vector<2x32xf32>
    %177 = arith.mulf %171, %175 : vector<2x32xf32>
    %178 = arith.addf %176, %177 : vector<2x32xf32>
    %179 = math.tanh %178 : vector<2x32xf32>
    %180 = arith.mulf %173, %179 : vector<2x32xf32>
    %181 = vector.extract_strided_slice %85 {offsets = [10, 0], sizes = [2, 128], strides = [1, 1]} : vector<16x128xf32> to vector<2x128xf32>
    %cst_104 = arith.constant dense<0.000000e+00> : vector<2x128xf32>
    %182 = tpu.matmul %180, %86, %cst_104 {dimension_numbers = #tpu.dot_dimension_numbers<[1], [0], [0], [1], [0, 0, 1, 1], [], []>} : vector<2x32xf32>, vector<32x128xf32>, vector<2x128xf32> -> vector<2x128xf32>
    %183 = arith.addf %181, %182 : vector<2x128xf32>
    %184 = arith.negf %183 : vector<2x128xf32>
    %185 = math.exp %184 : vector<2x128xf32>
    %cst_105 = arith.constant 1.000000e+00 : f32
    %186 = vector.broadcast %cst_105 : f32 to vector<2x128xf32>
    %187 = arith.addf %186, %185 : vector<2x128xf32>
    %188 = arith.divf %186, %187 : vector<2x128xf32>
    %189 = vector.extract_strided_slice %188 {offsets = [0, 0], sizes = [2, 32], strides = [1, 1]} : vector<2x128xf32> to vector<2x32xf32>
    %190 = vector.extract_strided_slice %188 {offsets = [0, 32], sizes = [2, 32], strides = [1, 1]} : vector<2x128xf32> to vector<2x32xf32>
    %191 = vector.extract_strided_slice %188 {offsets = [0, 96], sizes = [2, 32], strides = [1, 1]} : vector<2x128xf32> to vector<2x32xf32>
    %192 = vector.extract_strided_slice %183 {offsets = [0, 64], sizes = [2, 32], strides = [1, 1]} : vector<2x128xf32> to vector<2x32xf32>
    %193 = math.tanh %192 : vector<2x32xf32>
    %194 = arith.mulf %190, %178 : vector<2x32xf32>
    %195 = arith.mulf %189, %193 : vector<2x32xf32>
    %196 = arith.addf %194, %195 : vector<2x32xf32>
    %197 = math.tanh %196 : vector<2x32xf32>
    %198 = arith.mulf %191, %197 : vector<2x32xf32>
    %199 = vector.extract_strided_slice %85 {offsets = [12, 0], sizes = [2, 128], strides = [1, 1]} : vector<16x128xf32> to vector<2x128xf32>
    %cst_106 = arith.constant dense<0.000000e+00> : vector<2x128xf32>
    %200 = tpu.matmul %198, %86, %cst_106 {dimension_numbers = #tpu.dot_dimension_numbers<[1], [0], [0], [1], [0, 0, 1, 1], [], []>} : vector<2x32xf32>, vector<32x128xf32>, vector<2x128xf32> -> vector<2x128xf32>
    %201 = arith.addf %199, %200 : vector<2x128xf32>
    %202 = arith.negf %201 : vector<2x128xf32>
    %203 = math.exp %202 : vector<2x128xf32>
    %cst_107 = arith.constant 1.000000e+00 : f32
    %204 = vector.broadcast %cst_107 : f32 to vector<2x128xf32>
    %205 = arith.addf %204, %203 : vector<2x128xf32>
    %206 = arith.divf %204, %205 : vector<2x128xf32>
    %207 = vector.extract_strided_slice %206 {offsets = [0, 0], sizes = [2, 32], strides = [1, 1]} : vector<2x128xf32> to vector<2x32xf32>
    %208 = vector.extract_strided_slice %206 {offsets = [0, 32], sizes = [2, 32], strides = [1, 1]} : vector<2x128xf32> to vector<2x32xf32>
    %209 = vector.extract_strided_slice %206 {offsets = [0, 96], sizes = [2, 32], strides = [1, 1]} : vector<2x128xf32> to vector<2x32xf32>
    %210 = vector.extract_strided_slice %201 {offsets = [0, 64], sizes = [2, 32], strides = [1, 1]} : vector<2x128xf32> to vector<2x32xf32>
    %211 = math.tanh %210 : vector<2x32xf32>
    %212 = arith.mulf %208, %196 : vector<2x32xf32>
    %213 = arith.mulf %207, %211 : vector<2x32xf32>
    %214 = arith.addf %212, %213 : vector<2x32xf32>
    %215 = math.tanh %214 : vector<2x32xf32>
    %216 = arith.mulf %209, %215 : vector<2x32xf32>
    %217 = vector.extract_strided_slice %85 {offsets = [14, 0], sizes = [2, 128], strides = [1, 1]} : vector<16x128xf32> to vector<2x128xf32>
    %cst_108 = arith.constant dense<0.000000e+00> : vector<2x128xf32>
    %218 = tpu.matmul %216, %86, %cst_108 {dimension_numbers = #tpu.dot_dimension_numbers<[1], [0], [0], [1], [0, 0, 1, 1], [], []>} : vector<2x32xf32>, vector<32x128xf32>, vector<2x128xf32> -> vector<2x128xf32>
    %219 = arith.addf %217, %218 : vector<2x128xf32>
    %220 = arith.negf %219 : vector<2x128xf32>
    %221 = math.exp %220 : vector<2x128xf32>
    %cst_109 = arith.constant 1.000000e+00 : f32
    %222 = vector.broadcast %cst_109 : f32 to vector<2x128xf32>
    %223 = arith.addf %222, %221 : vector<2x128xf32>
    %224 = arith.divf %222, %223 : vector<2x128xf32>
    %225 = vector.extract_strided_slice %224 {offsets = [0, 0], sizes = [2, 32], strides = [1, 1]} : vector<2x128xf32> to vector<2x32xf32>
    %226 = vector.extract_strided_slice %224 {offsets = [0, 32], sizes = [2, 32], strides = [1, 1]} : vector<2x128xf32> to vector<2x32xf32>
    %227 = vector.extract_strided_slice %224 {offsets = [0, 96], sizes = [2, 32], strides = [1, 1]} : vector<2x128xf32> to vector<2x32xf32>
    %228 = vector.extract_strided_slice %219 {offsets = [0, 64], sizes = [2, 32], strides = [1, 1]} : vector<2x128xf32> to vector<2x32xf32>
    %229 = math.tanh %228 : vector<2x32xf32>
    %230 = arith.mulf %226, %214 : vector<2x32xf32>
    %231 = arith.mulf %225, %229 : vector<2x32xf32>
    %232 = arith.addf %230, %231 : vector<2x32xf32>
    %233 = math.tanh %232 : vector<2x32xf32>
    %234 = arith.mulf %227, %233 : vector<2x32xf32>
    %235 = tpu.concatenate %108, %126, %144, %162, %180, %198, %216, %234 in 1 : vector<2x32xf32>, vector<2x32xf32>, vector<2x32xf32>, vector<2x32xf32>, vector<2x32xf32>, vector<2x32xf32>, vector<2x32xf32>, vector<2x32xf32> -> vector<2x256xf32>
    %c0_110 = arith.constant 0 : index
    %c0_111 = arith.constant 0 : index
    %236 = vector.load %arg7[%c0_110, %c0_111] : memref<2x256xf32, #tpu.memory_space<vmem>>, vector<2x256xf32>
    tpu.vector_store %arg7[%c0_110, %c0_111], %235 {strides = array<i32>} : memref<2x256xf32, #tpu.memory_space<vmem>>, vector<2x256xf32>,
    %c0_112 = arith.constant 0 : index
    %c0_113 = arith.constant 0 : index
    %c0_114 = arith.constant 0 : index
    %237 = vector.load %arg8[%c0_112, %c0_113, %c0_114] : memref<1x2x32xf32, #tpu.memory_space<vmem>>, vector<1x2x32xf32>
    %238 = vector.shape_cast %237 : vector<1x2x32xf32> to vector<2x32xf32>
    %239 = vector.shape_cast %234 : vector<2x32xf32> to vector<1x2x32xf32>
    tpu.vector_store %arg8[%c0_112, %c0_113, %c0_114], %239 {strides = array<i32>} : memref<1x2x32xf32, #tpu.memory_space<vmem>>, vector<1x2x32xf32>,
    %c0_115 = arith.constant 0 : index
    %c0_116 = arith.constant 0 : index
    %c0_117 = arith.constant 0 : index
    %240 = vector.load %arg9[%c0_115, %c0_116, %c0_117] : memref<1x2x32xf32, #tpu.memory_space<vmem>>, vector<1x2x32xf32>
    %241 = vector.shape_cast %240 : vector<1x2x32xf32> to vector<2x32xf32>
    %242 = vector.shape_cast %232 : vector<2x32xf32> to vector<1x2x32xf32>
    tpu.vector_store %arg9[%c0_115, %c0_116, %c0_117], %242 {strides = array<i32>} : memref<1x2x32xf32, #tpu.memory_space<vmem>>, vector<1x2x32xf32>,
    return
  }
}

</mosaic_0001>

<bundles_post_ra>
// kernel: tpu_custom_call.1
= control target key start
LH: loop header
LB: loop body
LE: loop exit
PB: predicated region body
PF: predicated region fallthrough
CT: control target
= control target key end

     0   :  { %15 = vsyncpa [#allocation5], 0  ;;  %s1913_s0 = inlined_call_operand.vmem [shape: s32[2,8], index: 0, kind: input, shape index: {}]   ;;  %s1914_s1 = inlined_call_operand.vmem [shape: f32[50,1,16], index: 1, kind: input, shape index: {}]   ;;  %s1915_s2 = inlined_call_operand.vmem [shape: f32[16,128], index: 2, kind: input, shape index: {}]   ;;  %s1916_s3 = inlined_call_operand.vmem [shape: f32[32,128], index: 3, kind: input, shape index: {}]   ;;  %s1917_s4 = inlined_call_operand.vmem [shape: f32[1,128], index: 4, kind: input, shape index: {}]   ;;  %s1918_s5 = inlined_call_operand.vmem [shape: f32[1,2,32], index: 5, kind: input, shape index: {}]   ;;  %s1919_s6 = inlined_call_operand.vmem [shape: f32[1,2,32], index: 6, kind: input, shape index: {}]   ;;  %s1920_s7 = inlined_call_operand.hbm [shape: f32[2,256], index: 7, kind: output, shape index: {0}]   ;;  %s1921_s8 = inlined_call_operand.hbm [shape: f32[1,2,32], index: 8, kind: output, shape index: {1}]   ;;  %s1922_s9 = inlined_call_operand.hbm [shape: f32[1,2,32], index: 9, kind: output, shape index: {2}]  }
   0x1   :  { %16 = vsyncpa [#allocation4], 0 }
   0x2   :  { %17 = vsyncpa [#allocation8], 0  ;;  %s24_s11 = sshll.u32 %s1913_s0, 4  ;;  %s25_s11 = int_to_ptr.vmem [resolvable:$true] %s24_s11 }
   0x3   :  { %s1461_s12 = scalar_lea.vmem %s25_s11, 32  ;;  %p1466_p1 = scmp.lt.s32.totalorder %s25_s11, %s25_s11 }
   0x4   :  { %p1462_p0 = scmp.ne.s32.totalorder %s25_s11, %s1461_s12  ;;  %p1467_p2 = scmp.lt.s32.totalorder %s1461_s12, %s1461_s12 }
   0x6   :  { %p1468_p3 = por %p1467_p2, %p1466_p1 }
   0x8   :  { %p1469_p4 = pnand %p1468_p3, %p1462_p0 }
   0xa   :  { %1472 = shalt.err (!%p1469_p4)
}
   0xb   :  { %s1545_s13 = smov [#allocation3]  }
   0xc   :  { %27 = dma.vmem_to_smem %s25_s11, 32, %s1545_s13, [#allocation5]  }
   0xd   :  { %1539 = dma.done.wait [#allocation5], 32  }
   0xe   :  { %1540 = vsyncadd [#allocation5], 4294967264 }
   0xf   :  { %43 = sfence }
  0x10   :  { %v202_v0 = vld [vmem:[%s1916_s3] sm:$0xff]  ;;  %v203_v1 = vld [vmem:[%s1916_s3 + $0x8] sm:$0xff]  ;;  %s1617_s19 = sld [smem:[#allocation3]]  ;;  %v1546_v3 = vmov 0.0|0.0   ;;  %s1627_s23 = sld [smem:[#allocation3 + $0x1]]  ;;  %v204_v7 = vld [vmem:[%s1916_s3 + $0x10] sm:$0xff] }
  0x11   :  { %v111_v2 = vld [vmem:[%s1915_s2] sm:$0xff]  ;;  %1339 = vmatprep.subr.bf16.mxu1 %v1546_v3  ;;  %v1620_v4 = vpack.c.bf16 %v203_v1, %v202_v0  ;;  %v112_v5 = vld [vmem:[%s1915_s2 + $0x8] sm:$0xff]  ;;  %s1625_s22 = sld [smem:[#allocation3 + $0x80]]  ;;  %s1629_s24 = sld [smem:[#allocation3 + $0x81]]  ;;  %v205_v8 = vld [vmem:[%s1916_s3 + $0x18] sm:$0xff]  ;;  %vm47_vm0 = vcmask 122880  }
  0x12   :  { %v1335_v6 = vpack.c.bf16 %v112_v5, %v111_v2  ;;  %s1631_s25 = sld [smem:[#allocation3 + $0x2]]  ;;  %s1639_s29 = sld [smem:[#allocation3 + $0x3]]  ;;  %v1647_v9 = vpack.c.bf16 %v205_v8, %v204_v7  ;;  %vm1547_vm1 = vmmov 0   ;;  %v1548_v10 = vmov 0.0   ;;  %v206_v12 = vld [vmem:[%s1918_s5] sm:$0x3] }
  0x13   :  { %1341 = vmatpush3.bf16.msra.mxu1 %v1620_v4  ;;  %s1637_s28 = sld [smem:[#allocation3 + $0x82]]  ;;  %s1645_s10 = sld [smem:[#allocation3 + $0x83]]  ;;  %1255 = vmatprep.mubr.msk.f32.mxu1 %vm1547_vm1, %v1548_v10  ;;  %vm208_vm2 = vcmask 261120   ;;  %vm120_vm3 = vcmask 130048   ;;  %v1176_v32 = vld [vmem:[%s1917_s4] ss:$0 sm:$0xff] }
  0x14   :  { %1336 = vmatprep.subr.bf16.mxu0 %v1335_v6  ;;  %1342 = vmatprep.subr.bf16.mxu1 %v1546_v3  ;;  %s1649_s11 = sld [smem:[#allocation3 + $0x4]]  ;;  %s1653_s13 = sld [smem:[#allocation3 + $0x5]]  ;;  %v207_v39 = vld [vmem:[%s1919_s6] sm:$0x3]  ;;  %vm1074_vm4 = vcmask 523264   ;;  %vm1076_vm5 = vcmask 785408  }
  0x15   :  { %1338 = vmatpush3.bf16.msra.mxu0 %v1335_v6  ;;  %s1651_s12 = sld [smem:[#allocation3 + $0x84]]  ;;  %s1661_s16 = sld [smem:[#allocation3 + $0x85]]  ;;  %vm1096_vm6 = vcmask 261126  }
  0x16   :  { %s45_s15 = scalar_lea.vmem %s1914_s1, %s1617_s19  ;;  %1345 = vmatprep.subr.bf16.mxu0 %v1546_v3  ;;  %s54_s26 = scalar_lea.vmem %s1914_s1, %s1627_s23 }
  0x17   :  { %v46_v11 = vld [vmem:[%s45_s15] sm:$0x1]  ;;  %s50_s18 = scalar_lea.vmem %s1914_s1, %s1625_s22  ;;  %1344 = vmatpush3.bf16.msra.mxu1 %v1647_v9  ;;  %s58_s30 = scalar_lea.vmem %s1914_s1, %s1629_s24 }
  0x18   :  { %48 = vst.msk [vmem:[#allocation2] sm:$0x1] %vm47_vm0, %v46_v11  ;;  %v51_v13 = vld [vmem:[%s50_s18] sm:$0x1]  ;;  %s62_s23 = scalar_lea.vmem %s1914_s1, %s1631_s25  ;;  %1351 = vmatprep.subr.bf16.mxu1 %v1546_v3  ;;  %s70_s18 = scalar_lea.vmem %s1914_s1, %s1639_s29 }
  0x19   :  { %v55_v14 = vld [vmem:[%s54_s26] sm:$0x1]  ;;  %52 = vst.msk [vmem:[#allocation2 + $0x1] sm:$0x1] %vm47_vm0, %v51_v13  ;;  %s66_s17 = scalar_lea.vmem %s1914_s1, %s1637_s28  ;;  %s74_s21 = scalar_lea.vmem %s1914_s1, %s1645_s10 }
  0x1a   :  { %56 = vst.msk [vmem:[#allocation2 + $0x2] sm:$0x1] %vm47_vm0, %v55_v14  ;;  %v59_v15 = vld [vmem:[%s58_s30] sm:$0x1]  ;;  %s78_s2 = scalar_lea.vmem %s1914_s1, %s1649_s11  ;;  %1256 = vmatmul.mubr.msk.f32.vlgmr.msra.gmra.mrb[0].mxu1 %vm208_vm2, %v206_v12  ;;  %s86_s10 = scalar_lea.vmem %s1914_s1, %s1653_s13 }
  0x1b   :  { %v63_v16 = vld [vmem:[%s62_s23] sm:$0x1]  ;;  %60 = vst.msk [vmem:[#allocation2 + $0x3] sm:$0x1] %vm47_vm0, %v59_v15  ;;  %s82_s19 = scalar_lea.vmem %s1914_s1, %s1651_s12  ;;  %1353 = vmatpush3.bf16.msra.mxu1 %v1620_v4  ;;  %1277 = vmatprep.mubr.msk.f32.mxu1 %vm1547_vm1, %v1548_v10  ;;  %s90_s14 = scalar_lea.vmem %s1914_s1, %s1661_s16 }
  0x1c   :  { %64 = vst.msk [vmem:[#allocation2 + $0x4] sm:$0x1] %vm47_vm0, %v63_v16  ;;  %v67_v17 = vld [vmem:[%s66_s17] sm:$0x1]  ;;  %s1172_s12 = sld [smem:[#allocation3 + $0x6]]  ;;  %1354 = vmatprep.subr.bf16.mxu1 %v1546_v3  ;;  %s1174_s23 = sld [smem:[#allocation3 + $0x7]] }
  0x1d   :  { %v71_v18 = vld [vmem:[%s70_s18] sm:$0x1]  ;;  %68 = vst.msk [vmem:[#allocation2 + $0x5] sm:$0x1] %vm47_vm0, %v67_v17  ;;  %s1173_s13 = sld [smem:[#allocation3 + $0x86]]  ;;  %s1175_s5 = sld [smem:[#allocation3 + $0x87]] }
  0x1e   :  { %72 = vst.msk [vmem:[#allocation2 + $0x6] sm:$0x1] %vm47_vm0, %v71_v18  ;;  %v75_v19 = vld [vmem:[%s74_s21] sm:$0x1]  ;;  %s1549_s29 = smov 64   ;;  %s1550_s30 = smov 32  }
  0x1f   :  { %v79_v20 = vld [vmem:[%s78_s2] sm:$0x1]  ;;  %76 = vst.msk [vmem:[#allocation2 + $0x7] sm:$0x1] %vm47_vm0, %v75_v19  ;;  %1356 = vmatpush3.bf16.msra.mxu1 %v1647_v9  ;;  %s1551_s4 = smov 96   ;;  %s1552_s6 = smov [#allocation6]  }
  0x20   :  { %80 = vst.msk [vmem:[#allocation2 + $0x8] sm:$0x1] %vm47_vm0, %v79_v20  ;;  %v83_v21 = vld [vmem:[%s82_s19] sm:$0x1]  ;;  %1363 = vmatprep.subr.bf16.mxu1 %v1546_v3 }
  0x21   :  { %v87_v22 = vld [vmem:[%s86_s10] sm:$0x1]  ;;  %84 = vst.msk [vmem:[#allocation2 + $0x9] sm:$0x1] %vm47_vm0, %v83_v21  ;;  %s1109_s10 = sshll.u32 %s1552_s6, 4  ;;  %s1110_s10 = int_to_ptr.vmem [resolvable:$true] %s1109_s10 }
  0x22   :  { %88 = vst.msk [vmem:[#allocation2 + $0xa] sm:$0x1] %vm47_vm0, %v87_v22  ;;  %v91_v23 = vld [vmem:[%s90_s14] sm:$0x1]  ;;  %s94_s17 = scalar_lea.vmem %s1914_s1, %s1172_s12  ;;  %s102_s21 = scalar_lea.vmem %s1914_s1, %s1174_s23 }
  0x23   :  { %92 = vst.msk [vmem:[#allocation2 + $0xb] sm:$0x1] %vm47_vm0, %v91_v23  ;;  %v95_v25 = vld [vmem:[%s94_s17] sm:$0x1]  ;;  %s98_s18 = scalar_lea.vmem %s1914_s1, %s1173_s13  ;;  %s106_s2 = scalar_lea.vmem %s1914_s1, %s1175_s5 }
  0x24   :  { %96 = vst.msk [vmem:[#allocation2 + $0xc] sm:$0x1] %vm47_vm0, %v95_v25  ;;  %v99_v26 = vld [vmem:[%s98_s18] sm:$0x1]  ;;  %s1473_s11 = scalar_lea.vmem %s1110_s10, 64  ;;  %p1478_p6 = scmp.lt.s32.totalorder %s1110_s10, %s1110_s10 }
  0x25   :  { %v103_v27 = vld [vmem:[%s102_s21] sm:$0x1]  ;;  %100 = vst.msk [vmem:[#allocation2 + $0xd] sm:$0x1] %vm47_vm0, %v99_v26  ;;  %p1474_p5 = scmp.ne.s32.totalorder %s1110_s10, %s1473_s11  ;;  %p1479_p7 = scmp.lt.s32.totalorder %s1473_s11, %s1473_s11 }
  0x26   :  { %v109_v24 = vld [vmem:[#allocation2] sm:$0xff]  ;;  %104 = vst.msk [vmem:[#allocation2 + $0xe] sm:$0x1] %vm47_vm0, %v103_v27 }
  0x27   :  { %1244 = vmatprep.mubr.msk.f32.mxu0 %vm120_vm3, %v109_v24  ;;  %v107_v28 = vld [vmem:[%s106_s2] sm:$0x1]  ;;  %p1480_p8 = por %p1479_p7, %p1478_p6 }
  0x28   :  { %108 = vst.msk [vmem:[#allocation2 + $0xf] sm:$0x1] %vm47_vm0, %v107_v28 }
  0x29   :  { %p1481_p9 = pnand %p1480_p8, %p1474_p5 }
  0x2f   :  { %v110_v29 = vld [vmem:[#allocation2 + $0x8] sm:$0xff] }
  0x30   :  { %1245 = vmatmul.mubr.msk.f32.vlgmr.msra.gmra.mrb[0].mxu0 %vm120_vm3, %v110_v29 }
  0x31   :  { %1347 = vmatpush3.bf16.msra.mxu0 %v1620_v4  ;;  %1266 = vmatprep.mubr.msk.f32.mxu0 %vm1547_vm1, %v1548_v10 }
  0x32   :  { %1348 = vmatprep.subr.bf16.mxu0 %v1546_v3 }
  0x35   :  { %1350 = vmatpush3.bf16.msra.mxu0 %v1647_v9 }
  0x36   :  { %1357 = vmatprep.subr.bf16.mxu0 %v1546_v3 }
  0xed   :  { %v278_v30 = vpop.f32.mrb[0].mxu1 }
  0xee   :  { %v1257_v31 = vpop.f32.mrb[1].mxu1 }
 0x103   :  { %v1246_v33 = vpop.f32.mrb[0].mxu0 }
 0x104   :  { %v1759_v34 = vadd.f32 %v1246_v33, %v1176_v32  ;;  %v193_v35 = vpop.f32.mrb[1].mxu0 }
 0x105   :  { %v1761_v36 = vadd.f32 %v1176_v32, %v193_v35 }
 0x107   :  { %v282_v37 = vadd.f32 %v278_v30, %v1761_v36 }
 0x109   :  { %1397 = vtanh.f32 %v282_v37  ;;  %v1180_v40 = vmul.f32 -1.442695, %v282_v37 }
 0x10b   :  { %1399 = vpow2.f32 %v1180_v40 }
 0x113   :  { %v1398_v38 = vpop.eup %1397 }
 0x114   :  { %296 = vrot.lane.b32.xlu0 %v1398_v38, %s1549_s29 }
 0x115   :  { %v1400_v41 = vpop.eup %1399 }
 0x116   :  { %v286_v42 = vadd.f32 1.0, %v1400_v41 }
 0x118   :  { %291 = vrot.lane.b32.xlu0 %v207_v39, %s1550_s30  ;;  %1401 = vrcp.f32 %v286_v42 }
 0x122   :  { %v1402_v43 = vpop.eup %1401 }
 0x186   :  { %v297_v44 = vpop.permute.xlu0 %296 }
 0x187   :  { %v299_v45 = vmul.f32 %v1402_v43, %v297_v44 }
 0x189   :  { %301 = vrot.lane.b32.xlu1 %v299_v45, %s1550_s30 }
 0x18a   :  { %v292_v46 = vpop.permute.xlu0 %291 }
 0x18b   :  { %v294_v47 = vmul.f32 %v1402_v43, %v292_v46 }
 0x1fb   :  { %v302_v48 = vpop.permute.xlu1 %301 }
 0x1fc   :  { %v304_v49 = vadd.f32 %v302_v48, %v294_v47 }
 0x1fe   :  { %1403 = vtanh.f32 %v304_v49  ;;  %v398_v1 = vrot.slane %v304_v49, 6 }
 0x208   :  { %v1404_v50 = vpop.eup %1403 }
 0x209   :  { %307 = vrot.lane.b32.xlu1 %v1404_v50, %s1549_s29 }
 0x27b   :  { %v308_v51 = vpop.permute.xlu1 %307 }
 0x27c   :  { %v310_v52 = vmul.f32 %v1402_v43, %v308_v51 }
 0x27e   :  { %312 = vrot.lane.b32.xlu0 %v310_v52, %s1550_s30 }
 0x2f0   :  { %v1772_v53 = vpop.permute.xlu0 %312 }
 0x2f1   :  { %1267 = vmatmul.mubr.msk.f32.vlgmr.msra.gmra.mrb[2].mxu0 %vm208_vm2, %v1772_v53 }
 0x2f2   :  { %1359 = vmatpush3.bf16.msra.mxu0 %v1620_v4  ;;  %1288 = vmatprep.mubr.msk.f32.mxu0 %vm1547_vm1, %v1548_v10 }
 0x2f3   :  { %1360 = vmatprep.subr.bf16.mxu0 %v1546_v3 }
 0x2f6   :  { %1362 = vmatpush3.bf16.msra.mxu0 %v1647_v9 }
 0x2f7   :  { %1369 = vmatprep.subr.bf16.mxu0 %v1546_v3 }
 0x3c4   :  { %v382_v54 = vpop.f32.mrb[2].mxu0 }
 0x3c5   :  { %v387_v55 = vrot.slane %v382_v54, 6  ;;  %v1268_v56 = vpop.f32.mrb[3].mxu0 }
 0x3c7   :  { %v389_v57 = vadd.f32 %v387_v55, %v1761_v36 }
 0x3c9   :  { %1405 = vtanh.f32 %v389_v57  ;;  %v1182_v59 = vmul.f32 -1.442695, %v389_v57 }
 0x3cb   :  { %1407 = vpow2.f32 %v1182_v59 }
 0x3d3   :  { %v1406_v58 = vpop.eup %1405 }
 0x3d4   :  { %402 = vrot.lane.b32.xlu1 %v1406_v58, %s1549_s29 }
 0x3d5   :  { %v1408_v60 = vpop.eup %1407 }
 0x3d6   :  { %v393_v61 = vadd.f32 1.0, %v1408_v60 }
 0x3d8   :  { %1409 = vrcp.f32 %v393_v61 }
 0x3e2   :  { %v1410_v62 = vpop.eup %1409 }
 0x3e3   :  { %v400_v2 = vmul.f32 %v1410_v62, %v398_v1 }
 0x446   :  { %v403_v63 = vpop.permute.xlu1 %402 }
 0x447   :  { %v405_v0 = vmul.f32 %v1410_v62, %v403_v63 }
 0x449   :  { %407 = vrot.lane.b32.xlu0 %v405_v0, %s1550_s30 }
 0x4bb   :  { %v408_v5 = vpop.permute.xlu0 %407 }
 0x4bc   :  { %v410_v6 = vadd.f32 %v408_v5, %v400_v2 }
 0x4be   :  { %1411 = vtanh.f32 %v410_v6  ;;  %v505_v25 = vrot.slane %v410_v6, 6 }
 0x4c8   :  { %v1412_v7 = vpop.eup %1411 }
 0x4c9   :  { %413 = vrot.lane.b32.xlu1 %v1412_v7, %s1549_s29 }
 0x53b   :  { %v414_v8 = vpop.permute.xlu1 %413 }
 0x53c   :  { %v1786_v11 = vmul.f32 %v1410_v62, %v414_v8 }
 0x53e   :  { %v418_v12 = vrot.slane %v1786_v11, 2 }
 0x540   :  { %419 = vrot.lane.b32.xlu0 %v418_v12, %s1550_s30 }
 0x5b2   :  { %v420_v13 = vpop.permute.xlu0 %419 }
 0x5b3   :  { %1278 = vmatmul.mubr.msk.f32.vlgmr.msra.gmra.mrb[2].mxu1 %vm208_vm2, %v420_v13 }
 0x5b4   :  { %1365 = vmatpush3.bf16.msra.mxu1 %v1620_v4  ;;  %1299 = vmatprep.mubr.msk.f32.mxu1 %vm1547_vm1, %v1548_v10 }
 0x5b5   :  { %1366 = vmatprep.subr.bf16.mxu1 %v1546_v3 }
 0x5b8   :  { %1368 = vmatpush3.bf16.msra.mxu1 %v1647_v9 }
 0x5b9   :  { %1375 = vmatprep.subr.bf16.mxu1 %v1546_v3 }
 0x686   :  { %v489_v14 = vpop.f32.mrb[2].mxu1 }
 0x687   :  { %v494_v15 = vrot.slane %v489_v14, 4  ;;  %v1279_v16 = vpop.f32.mrb[3].mxu1 }
 0x689   :  { %v496_v17 = vadd.f32 %v494_v15, %v1761_v36 }
 0x68b   :  { %1413 = vtanh.f32 %v496_v17  ;;  %v1184_v19 = vmul.f32 -1.442695, %v496_v17 }
 0x68d   :  { %1415 = vpow2.f32 %v1184_v19 }
 0x695   :  { %v1414_v18 = vpop.eup %1413 }
 0x696   :  { %509 = vrot.lane.b32.xlu1 %v1414_v18, %s1549_s29 }
 0x697   :  { %v1416_v20 = vpop.eup %1415 }
 0x698   :  { %v500_v21 = vadd.f32 1.0, %v1416_v20 }
 0x69a   :  { %1417 = vrcp.f32 %v500_v21 }
 0x6a4   :  { %v1418_v22 = vpop.eup %1417 }
 0x6a5   :  { %v507_v26 = vmul.f32 %v1418_v22, %v505_v25 }
 0x708   :  { %v510_v23 = vpop.permute.xlu1 %509 }
 0x709   :  { %v512_v24 = vmul.f32 %v1418_v22, %v510_v23 }
 0x70b   :  { %514 = vrot.lane.b32.xlu0 %v512_v24, %s1550_s30 }
 0x77d   :  { %v515_v27 = vpop.permute.xlu0 %514 }
 0x77e   :  { %v517_v28 = vadd.f32 %v515_v27, %v507_v26 }
 0x780   :  { %1419 = vtanh.f32 %v517_v28  ;;  %v612_v47 = vrot.slane %v517_v28, 6 }
 0x78a   :  { %v1420_v29 = vpop.eup %1419 }
 0x78b   :  { %520 = vrot.lane.b32.xlu1 %v1420_v29, %s1549_s29 }
 0x7fd   :  { %v521_v30 = vpop.permute.xlu1 %520 }
 0x7fe   :  { %v1803_v31 = vmul.f32 %v1418_v22, %v521_v30 }
 0x800   :  { %v525_v32 = vrot.slane %v1803_v31, 4 }
 0x802   :  { %526 = vrot.lane.b32.xlu0 %v525_v32, %s1550_s30 }
 0x874   :  { %v527_v33 = vpop.permute.xlu0 %526 }
 0x875   :  { %1289 = vmatmul.mubr.msk.f32.vlgmr.msra.gmra.mrb[4].mxu0 %vm208_vm2, %v527_v33 }
 0x876   :  { %1371 = vmatpush3.bf16.msra.mxu0 %v1620_v4  ;;  %1310 = vmatprep.mubr.msk.f32.mxu0 %vm1547_vm1, %v1548_v10 }
 0x877   :  { %1372 = vmatprep.subr.bf16.mxu0 %v1546_v3 }
 0x87a   :  { %1374 = vmatpush3.bf16.msra.mxu0 %v1647_v9 }
 0x87b   :  { %1381 = vmatprep.subr.bf16.mxu0 %v1546_v3 }
 0x948   :  { %v596_v35 = vpop.f32.mrb[4].mxu0 }
 0x949   :  { %v601_v37 = vrot.slane %v596_v35, 2  ;;  %v1290_v38 = vpop.f32.mrb[5].mxu0 }
 0x94b   :  { %v603_v39 = vadd.f32 %v601_v37, %v1761_v36 }
 0x94d   :  { %1421 = vtanh.f32 %v603_v39  ;;  %v1186_v41 = vmul.f32 -1.442695, %v603_v39 }
 0x94f   :  { %1423 = vpow2.f32 %v1186_v41 }
 0x957   :  { %v1422_v40 = vpop.eup %1421 }
 0x958   :  { %616 = vrot.lane.b32.xlu1 %v1422_v40, %s1549_s29 }
 0x959   :  { %v1424_v42 = vpop.eup %1423 }
 0x95a   :  { %v607_v43 = vadd.f32 1.0, %v1424_v42 }
 0x95c   :  { %1425 = vrcp.f32 %v607_v43 }
 0x966   :  { %v1426_v44 = vpop.eup %1425 }
 0x967   :  { %v614_v48 = vmul.f32 %v1426_v44, %v612_v47 }
 0x9ca   :  { %v617_v45 = vpop.permute.xlu1 %616 }
 0x9cb   :  { %v619_v46 = vmul.f32 %v1426_v44, %v617_v45 }
 0x9cd   :  { %621 = vrot.lane.b32.xlu0 %v619_v46, %s1550_s30 }
 0xa3f   :  { %v622_v49 = vpop.permute.xlu0 %621 }
 0xa40   :  { %v624_v50 = vadd.f32 %v622_v49, %v614_v48 }
 0xa42   :  { %1427 = vtanh.f32 %v624_v50  ;;  %v716_v2 = vrot.slane %v624_v50, 6 }
 0xa4c   :  { %v1428_v36 = vpop.eup %1427 }
 0xa4d   :  { %627 = vrot.lane.b32.xlu1 %v1428_v36, %s1549_s29 }
 0xabf   :  { %v628_v51 = vpop.permute.xlu1 %627 }
 0xac0   :  { %v1820_v52 = vmul.f32 %v1426_v44, %v628_v51 }
 0xac2   :  { %v632_v54 = vrot.slane %v1820_v52, 6 }
 0xac4   :  { %633 = vrot.lane.b32.xlu0 %v632_v54, %s1550_s30 }
 0xb36   :  { %v634_v55 = vpop.permute.xlu0 %633 }
 0xb37   :  { %1300 = vmatmul.mubr.msk.f32.vlgmr.msra.gmra.mrb[4].mxu1 %vm208_vm2, %v634_v55 }
 0xb38   :  { %1377 = vmatpush3.bf16.msra.mxu1 %v1620_v4  ;;  %1321 = vmatprep.mubr.msk.f32.mxu1 %vm1547_vm1, %v1548_v10 }
 0xb39   :  { %1378 = vmatprep.subr.bf16.mxu1 %v1546_v3 }
 0xb3c   :  { %1380 = vmatpush3.bf16.msra.mxu1 %v1647_v9 }
 0xc0a   :  { %v703_v56 = vpop.f32.mrb[4].mxu1 }
 0xc0b   :  { %v707_v57 = vadd.f32 %v703_v56, %v1759_v34  ;;  %v1301_v58 = vpop.f32.mrb[5].mxu1 }
 0xc0d   :  { %1429 = vtanh.f32 %v707_v57  ;;  %v1188_v60 = vmul.f32 -1.442695, %v707_v57 }
 0xc0f   :  { %1431 = vpow2.f32 %v1188_v60 }
 0xc17   :  { %v1430_v59 = vpop.eup %1429 }
 0xc18   :  { %720 = vrot.lane.b32.xlu1 %v1430_v59, %s1549_s29 }
 0xc19   :  { %v1432_v61 = vpop.eup %1431 }
 0xc1a   :  { %v711_v62 = vadd.f32 1.0, %v1432_v61 }
 0xc1c   :  { %1433 = vrcp.f32 %v711_v62 }
 0xc26   :  { %v1434_v63 = vpop.eup %1433 }
 0xc27   :  { %v718_v5 = vmul.f32 %v1434_v63, %v716_v2 }
 0xc8a   :  { %v721_v0 = vpop.permute.xlu1 %720 }
 0xc8b   :  { %v723_v1 = vmul.f32 %v1434_v63, %v721_v0 }
 0xc8d   :  { %725 = vrot.lane.b32.xlu0 %v723_v1, %s1550_s30 }
 0xcff   :  { %v726_v6 = vpop.permute.xlu0 %725 }
 0xd00   :  { %v728_v7 = vadd.f32 %v726_v6, %v718_v5 }
 0xd02   :  { %1435 = vtanh.f32 %v728_v7 }
 0xd0c   :  { %v1436_v8 = vpop.eup %1435 }
 0xd0d   :  { %731 = vrot.lane.b32.xlu1 %v1436_v8, %s1549_s29 }
 0xd7f   :  { %v732_v13 = vpop.permute.xlu1 %731 }
 0xd80   :  { %v734_v14 = vmul.f32 %v1434_v63, %v732_v13 }
 0xd82   :  { %736 = vrot.lane.b32.xlu0 %v734_v14, %s1550_s30 }
 0xdf4   :  { %v1837_v15 = vpop.permute.xlu0 %736 }
 0xdf5   :  { %1311 = vmatmul.mubr.msk.f32.vlgmr.msra.gmra.mrb[6].mxu0 %vm208_vm2, %v1837_v15 }
 0xdf6   :  { %1383 = vmatpush3.bf16.msra.mxu0 %v1620_v4  ;;  %1332 = vmatprep.mubr.msk.f32.mxu0 %vm1547_vm1, %v1548_v10 }
 0xdf7   :  { %1384 = vmatprep.subr.bf16.mxu0 %v1546_v3  ;;  %v822_v3 = vrot.slane %v728_v7, 6 }
 0xdfa   :  { %1386 = vmatpush3.bf16.msra.mxu0 %v1647_v9 }
 0xec8   :  { %v806_v16 = vpop.f32.mrb[6].mxu0 }
 0xec9   :  { %v811_v17 = vrot.slane %v806_v16, 6  ;;  %v1312_v18 = vpop.f32.mrb[7].mxu0 }
 0xecb   :  { %v813_v19 = vadd.f32 %v811_v17, %v1759_v34 }
 0xecd   :  { %1437 = vtanh.f32 %v813_v19  ;;  %v1190_v21 = vmul.f32 -1.442695, %v813_v19 }
 0xecf   :  { %1439 = vpow2.f32 %v1190_v21 }
 0xed7   :  { %v1438_v20 = vpop.eup %1437 }
 0xed8   :  { %826 = vrot.lane.b32.xlu1 %v1438_v20, %s1549_s29 }
 0xed9   :  { %v1440_v22 = vpop.eup %1439 }
 0xeda   :  { %v817_v4 = vadd.f32 1.0, %v1440_v22 }
 0xedc   :  { %1441 = vrcp.f32 %v817_v4 }
 0xee6   :  { %v1442_v23 = vpop.eup %1441 }
 0xee7   :  { %v824_v9 = vmul.f32 %v1442_v23, %v822_v3 }
 0xf4a   :  { %v827_v10 = vpop.permute.xlu1 %826 }
 0xf4b   :  { %v829_v24 = vmul.f32 %v1442_v23, %v827_v10 }
 0xf4d   :  { %831 = vrot.lane.b32.xlu0 %v829_v24, %s1550_s30 }
 0xfbf   :  { %v832_v25 = vpop.permute.xlu0 %831 }
 0xfc0   :  { %v834_v26 = vadd.f32 %v832_v25, %v824_v9 }
 0xfc2   :  { %1443 = vtanh.f32 %v834_v26  ;;  %v929_v47 = vrot.slane %v834_v26, 6 }
 0xfcc   :  { %v1444_v27 = vpop.eup %1443 }
 0xfcd   :  { %837 = vrot.lane.b32.xlu1 %v1444_v27, %s1549_s29 }
0x103f   :  { %v838_v28 = vpop.permute.xlu1 %837 }
0x1040   :  { %v840_v29 = vmul.f32 %v1442_v23, %v838_v28 }
0x1042   :  { %v842_v30 = vrot.slane %v840_v29, 2 }
0x1044   :  { %843 = vrot.lane.b32.xlu0 %v842_v30, %s1550_s30 }
0x10b6   :  { %v844_v33 = vpop.permute.xlu0 %843 }
0x10b7   :  { %1322 = vmatmul.mubr.msk.f32.vlgmr.msra.gmra.mrb[6].mxu1 %vm208_vm2, %v844_v33 }
0x118a   :  { %v913_v35 = vpop.f32.mrb[6].mxu1 }
0x118b   :  { %v918_v37 = vrot.slane %v913_v35, 4  ;;  %v1323_v38 = vpop.f32.mrb[7].mxu1 }
0x118d   :  { %v920_v39 = vadd.f32 %v918_v37, %v1759_v34 }
0x118f   :  { %1445 = vtanh.f32 %v920_v39  ;;  %v1192_v41 = vmul.f32 -1.442695, %v920_v39 }
0x1191   :  { %1447 = vpow2.f32 %v1192_v41 }
0x1199   :  { %v1446_v40 = vpop.eup %1445 }
0x119a   :  { %933 = vrot.lane.b32.xlu1 %v1446_v40, %s1549_s29 }
0x119b   :  { %v1448_v42 = vpop.eup %1447 }
0x119c   :  { %v924_v43 = vadd.f32 1.0, %v1448_v42 }
0x119e   :  { %1449 = vrcp.f32 %v924_v43 }
0x11a8   :  { %v1450_v44 = vpop.eup %1449 }
0x11a9   :  { %v931_v48 = vmul.f32 %v1450_v44, %v929_v47 }
0x120c   :  { %v934_v45 = vpop.permute.xlu1 %933 }
0x120d   :  { %v936_v46 = vmul.f32 %v1450_v44, %v934_v45 }
0x120f   :  { %938 = vrot.lane.b32.xlu0 %v936_v46, %s1550_s30 }
0x1281   :  { %v939_v49 = vpop.permute.xlu0 %938 }
0x1282   :  { %v941_v50 = vadd.f32 %v939_v49, %v931_v48 }
0x1284   :  { %1451 = vtanh.f32 %v941_v50 }
0x128e   :  { %v1452_v36 = vpop.eup %1451 }
0x128f   :  { %944 = vrot.lane.b32.xlu1 %v1452_v36, %s1549_s29 }
0x1301   :  { %v945_v51 = vpop.permute.xlu1 %944 }
0x1302   :  { %v947_v55 = vmul.f32 %v1450_v44, %v945_v51 }
0x1304   :  { %v949_v56 = vrot.slane %v947_v55, 4 }
0x1306   :  { %950 = vrot.lane.b32.xlu0 %v949_v56, %s1550_s30 }
0x1378   :  { %v951_v57 = vpop.permute.xlu0 %950 }
0x1379   :  { %1333 = vmatmul.mubr.msk.f32.vlgmr.msra.gmra.mrb[8].mxu0 %vm208_vm2, %v951_v57 }
0x144c   :  { %v1020_v58 = vpop.f32.mrb[8].mxu0 }
0x144d   :  { %v1025_v59 = vrot.slane %v1020_v58, 2  ;;  %v1334_v60 = vpop.f32.mrb[9].mxu0 }
0x144f   :  { %v1027_v61 = vadd.f32 %v1025_v59, %v1759_v34  ;;  %v1036_v34 = vrot.slane %v941_v50, 6 }
0x1451   :  { %1453 = vtanh.f32 %v1027_v61  ;;  %v1194_v63 = vmul.f32 -1.442695, %v1027_v61 }
0x1453   :  { %1455 = vpow2.f32 %v1194_v63 }
0x145b   :  { %v1454_v62 = vpop.eup %1453 }
0x145c   :  { %1040 = vrot.lane.b32.xlu1 %v1454_v62, %s1549_s29 }
0x145d   :  { %v1456_v0 = vpop.eup %1455 }
0x145e   :  { %v1031_v1 = vadd.f32 1.0, %v1456_v0 }
0x1460   :  { %1457 = vrcp.f32 %v1031_v1 }
0x146a   :  { %v1458_v2 = vpop.eup %1457 }
0x146b   :  { %v1038_v7 = vmul.f32 %v1458_v2, %v1036_v34 }
0x14ce   :  { %v1041_v5 = vpop.permute.xlu1 %1040 }
0x14cf   :  { %v1043_v6 = vmul.f32 %v1458_v2, %v1041_v5 }
0x14d1   :  { %1045 = vrot.lane.b32.xlu0 %v1043_v6, %s1550_s30 }
0x14d5   :  { %1056 = vrot.lane.b32.xlu0 %v418_v12, %s1549_s29 }
0x14d9   :  { %1059 = vrot.lane.b32.xlu0 %v525_v32, %s1551_s4 }
0x1543   :  { %v1046_v8 = vpop.permute.xlu0 %1045 }
0x1544   :  { %v1048_v13 = vadd.f32 %v1046_v8, %v1038_v7 }
0x1546   :  { %1459 = vtanh.f32 %v1048_v13 }
0x1547   :  { %v1057_v16 = vpop.permute.xlu0 %1056 }
0x1548   :  { %v1073_v32 = vsel %vm208_vm2, %v1772_v53, %v1057_v16 }
0x154b   :  { %v1060_v12 = vpop.permute.xlu0 %1059 }
0x154c   :  { %v1075_v18 = vsel %vm1074_vm4, %v1073_v32, %v1060_v12 }
0x154d   :  { %v1077_v4 = vsel %vm1076_vm5, %v1075_v18, %v632_v54 }
0x1550   :  { %v1460_v14 = vpop.eup %1459 }
0x1551   :  { %1051 = vrot.lane.b32.xlu1 %v1460_v14, %s1549_s29 }
0x1555   :  { %1064 = vrot.lane.b32.xlu1 %v842_v30, %s1549_s29 }
0x1559   :  { %1067 = vrot.lane.b32.xlu1 %v949_v56, %s1551_s4 }
0x155d   :  { %1099 = vrot.lane.b32.xlu1 %v1048_v13, %s1551_s4 }
0x15c3   :  { %v1052_v17 = vpop.permute.xlu1 %1051 }
0x15c4   :  { %v1054_v11 = vmul.f32 %v1458_v2, %v1052_v17 }
0x15c6   :  { %1093 = vrot.lane.b32.xlu0 %v1054_v11, %s1550_s30  ;;  %v1071_v19 = vrot.slane %v1054_v11, 6 }
0x15c7   :  { %v1065_v31 = vpop.permute.xlu1 %1064 }
0x15c8   :  { %v1078_v20 = vsel %vm208_vm2, %v1837_v15, %v1065_v31 }
0x15cb   :  { %v1068_v21 = vpop.permute.xlu1 %1067 }
0x15cc   :  { %v1079_v22 = vsel %vm1074_vm4, %v1078_v20, %v1068_v21 }
0x15cd   :  { %v1080_v23 = vsel %vm1076_vm5, %v1079_v22, %v1071_v19 }
0x15ce   :  { %v1083_v10 = vcombine.low %v1077_v4, %v1080_v23 }
0x15cf   :  { %v1100_v24 = vpop.permute.xlu1 %1099 }
0x15d0   :  { %1102 = vst.msk [vmem:[#allocation9 - $0x6] sm:$0xc0] %vm1096_vm6, %v1100_v24  ;;  %1195 = vst.sshfl [vmem:[#allocation6] sm:$0x33 pattern:$0x76325410] %v1083_v10 }
0x15d1   :  { %1484 = shalt.err (!%p1481_p9)
}
0x15d2   :  { %s1485_s12 = scalar_lea.hbm %s1920_s7, 64 }
0x15d3   :  { %p1486_p10 = scmp.ne.s32.totalorder %s1920_s7, %s1485_s12  ;;  %p1489_p11 = scmp.lt.u32.totalorder %s1485_s12, %s1920_s7 }
0x15d5   :  { %p1491_p12 = pnand %p1489_p11, %p1486_p10 }
0x15d7   :  { %1494 = shalt.err (!%p1491_p12)
}
0x15d8   :  { %1112 = dma.vmem_to_hbm [thread:$0]  %s1110_s10, 64, %s1920_s7, [#allocation4]  }
0x15d9   :  { %s1553_s0 = smov [#allocation7]   ;;  %s1554_s18 = smov [#allocation9]  }
0x15da   :  { %s1119_s24 = sshll.u32 %s1553_s0, 4  ;;  %s1129_s25 = sshll.u32 %s1554_s18, 4  ;;  %s1120_s24 = int_to_ptr.vmem [resolvable:$true] %s1119_s24  ;;  %s1130_s25 = int_to_ptr.vmem [resolvable:$true] %s1129_s25 }
0x15db   :  { %s1495_s20 = scalar_lea.vmem %s1120_s24, 32  ;;  %p1500_p0 = scmp.lt.s32.totalorder %s1120_s24, %s1120_s24 }
0x15dc   :  { %p1496_p13 = scmp.ne.s32.totalorder %s1120_s24, %s1495_s20  ;;  %p1501_p1 = scmp.lt.s32.totalorder %s1495_s20, %s1495_s20 }
0x15de   :  { %p1502_p2 = por %p1501_p1, %p1500_p0 }
0x15e0   :  { %p1503_p3 = pnand %p1502_p2, %p1496_p13 }
0x1638   :  { %v1094_v53 = vpop.permute.xlu0 %1093 }
0x1639   :  { %1097 = vst.msk [vmem:[#allocation7 - $0x6] sm:$0xc0] %vm1096_vm6, %v1094_v53 }
0x163a   :  { %1506 = shalt.err (!%p1503_p3)
}
0x163b   :  { %s1507_s7 = scalar_lea.hbm %s1921_s8, 32 }
0x163c   :  { %p1508_p4 = scmp.ne.s32.totalorder %s1921_s8, %s1507_s7  ;;  %p1511_p5 = scmp.lt.u32.totalorder %s1507_s7, %s1921_s8 }
0x163e   :  { %p1513_p6 = pnand %p1511_p5, %p1508_p4 }
0x1640   :  { %1516 = shalt.err (!%p1513_p6)
}
0x1641   :  { %1122 = dma.vmem_to_hbm [thread:$0]  %s1120_s24, 32, %s1921_s8, [#allocation8]  }
0x1642   :  { %s1517_s22 = scalar_lea.vmem %s1130_s25, 32  ;;  %p1522_p8 = scmp.lt.s32.totalorder %s1130_s25, %s1130_s25 }
0x1643   :  { %p1518_p7 = scmp.ne.s32.totalorder %s1130_s25, %s1517_s22  ;;  %p1523_p9 = scmp.lt.s32.totalorder %s1517_s22, %s1517_s22 }
0x1645   :  { %p1524_p10 = por %p1523_p9, %p1522_p8 }
0x1647   :  { %p1525_p11 = pnand %p1524_p10, %p1518_p7 }
0x1649   :  { %1528 = shalt.err (!%p1525_p11)
}
0x164a   :  { %s1529_s6 = scalar_lea.hbm %s1922_s9, 32 }
0x164b   :  { %p1530_p12 = scmp.ne.s32.totalorder %s1922_s9, %s1529_s6  ;;  %p1533_p13 = scmp.lt.u32.totalorder %s1529_s6, %s1922_s9 }
0x164d   :  { %p1535_p0 = pnand %p1533_p13, %p1530_p12 }
0x164f   :  { %1538 = shalt.err (!%p1535_p0)
}
0x1650   :  { %1132 = dma.vmem_to_hbm [thread:$0]  %s1130_s25, 32, %s1922_s9, [#allocation8]  }
0x1651   :  { %1541 = dma.done.wait [#allocation4], 64  }
0x1652   :  { %1542 = vsyncadd [#allocation4], 4294967232 }
0x1653   :  { %1543 = dma.done.wait [#allocation8], 64  }
0x1654   :  { %1544 = vsyncadd [#allocation8], 4294967232 }
0x1655   :  { %1142 = vsyncpa [#allocation4], 1 }
0x1656   :  { %1143 = vsyncpa [#allocation8], 1 }
0x1657   :  { %1144 = vsyncpa [#allocation5], 1 }

</bundles_post_ra>
